<compile_context>
chip_gen: v7x
topology: tpu7x:2x2x1
jax: 0.10.0
libtpu: 0.0.40
codegen_flags: <defaults>
</compile_context>

<pallas_src>
import functools
import numpy as np
import jax
import jax.numpy as jnp
from jax import lax
from jax.experimental import pallas as pl
from jax.experimental.pallas import tpu as pltpu

IMAGENET_MEAN = jnp.array([0.485, 0.456, 0.406], jnp.float32)
IMAGENET_STD = jnp.array([0.229, 0.224, 0.225], jnp.float32)


def _pick_tile(dim, target):
    """Largest multiple of 8 that divides `dim` and is <= target (full dim fallback)."""
    if dim <= 8 or dim % 8 != 0:
        return dim
    t = min(target, dim)
    t -= t % 8
    while dim % t != 0:
        t -= 8
    return t


# --------------------------- Pallas kernels ---------------------------------

def _matmul_bias_relu_kernel(p_ref, w_ref, b_ref, o_ref):
    # p_ref: (tm, K) bf16 im2col tile; w_ref: (K, Cout) bf16; b_ref: (1, Cout) f32
    # o_ref: (tm, Cout) f32 conv+ReLU output tile.
    acc = jnp.dot(p_ref[...], w_ref[...], preferred_element_type=jnp.float32)
    o_ref[...] = jnp.maximum(acc + b_ref[...], 0.0)


def _gram_kernel(f_ref, o_ref, acc_ref, *, scale):
    # f_ref: (tk, C) bf16 feature tile (channels-last, no transpose needed);
    # acc_ref: (C, C) f32 scratch accumulator; o_ref: (C, C) f32 gram matrix.
    @pl.when(pl.program_id(1) == 0)
    def _():
        acc_ref[...] = jnp.zeros_like(acc_ref)

    f = f_ref[...]
    acc_ref[...] += lax.dot_general(
        f, f, dimension_numbers=(((0,), (0,)), ((), ())),
        preferred_element_type=jnp.float32)

    @pl.when(pl.program_id(1) == pl.num_programs(1) - 1)
    def _():
        o_ref[...] = acc_ref[...] * scale


def _ssq_pair_kernel(x_ref, g_ref, n_ref, oxg_ref, oxn_ref):
    # Fused perceptual+noise reduction: one pass over xf streams it from HBM once.
    @pl.when(pl.program_id(0) == 0)
    def _():
        oxg_ref[...] = jnp.zeros_like(oxg_ref)
        oxn_ref[...] = jnp.zeros_like(oxn_ref)
    x = x_ref[...]
    dxg = x - g_ref[...]
    dxn = x - n_ref[...]
    oxg_ref[...] += jnp.sum(dxg * dxg, axis=0, keepdims=True)
    oxn_ref[...] += jnp.sum(dxn * dxn, axis=0, keepdims=True)


def _ssq_diff_kernel(a_ref, b_ref, o_ref):
    @pl.when(pl.program_id(0) == 0)
    def _():
        o_ref[...] = jnp.zeros_like(o_ref)
    d = a_ref[...] - b_ref[...]
    o_ref[...] += jnp.sum(d * d, axis=0, keepdims=True)


# --------------------------- Pallas wrappers ---------------------------------

def conv3x3_relu(x_nhwc, w_hwio, b, *, tm_target=512):
    """3x3 stride-1 'same' conv + ReLU: im2col + M-tiled bf16 MXU matmul (f32 acc)."""
    B, H, W, Cin = x_nhwc.shape
    Cout = w_hwio.shape[-1]
    M, K = H * W, 9 * Cin
    xp = jnp.pad(x_nhwc, ((0, 0), (1, 1), (1, 1), (0, 0)))
    cols = [xp[:, kh:kh + H, kw:kw + W, :] for kh in range(3) for kw in range(3)]
    # TODO(synk): in-kernel 9-tap halo conv (manual DMA) would avoid this 9x im2col.
    patches = jnp.concatenate(cols, axis=-1).reshape(B, M, K).astype(jnp.bfloat16)
    wmat = w_hwio.reshape(K, Cout).astype(jnp.bfloat16)
    bmat = b.reshape(1, Cout).astype(jnp.float32)
    tm = _pick_tile(M, tm_target)

    out = pl.pallas_call(
        _matmul_bias_relu_kernel,
        out_shape=jax.ShapeDtypeStruct((B, M, Cout), jnp.float32),
        grid=(B, M // tm),
        in_specs=[
            pl.BlockSpec((None, tm, K), lambda bi, mi: (bi, mi, 0)),
            pl.BlockSpec((K, Cout), lambda bi, mi: (0, 0)),   # VMEM-resident weight
            pl.BlockSpec((1, Cout), lambda bi, mi: (0, 0)),   # VMEM-resident bias
        ],
        out_specs=pl.BlockSpec((None, tm, Cout), lambda bi, mi: (bi, mi, 0)),
        compiler_params=pltpu.CompilerParams(
            dimension_semantics=("parallel", "parallel")),
    )(patches, wmat, bmat)
    return out.reshape(B, H, W, Cout)


def gram_matrix(feat_nhwc, *, tk_target=512):
    """Same semantics as NoisesPerceptualLoss._gram_mat; computed as F^T F from
    the channels-last (M, C) layout with an M-chunked reduction grid."""
    B, H, W, C = feat_nhwc.shape
    M = H * W
    f = feat_nhwc.reshape(B, M, C).astype(jnp.bfloat16)
    tk = _pick_tile(M, tk_target)
    kern = functools.partial(_gram_kernel, scale=1.0 / float(C * H * W))
    return pl.pallas_call(
        kern,
        out_shape=jax.ShapeDtypeStruct((B, C, C), jnp.float32),
        grid=(B, M // tk),
        in_specs=[pl.BlockSpec((None, tk, C), lambda bi, ki: (bi, ki, 0))],
        out_specs=pl.BlockSpec((None, C, C), lambda bi, ki: (bi, 0, 0)),
        scratch_shapes=[pltpu.VMEM((C, C), jnp.float32)],
        compiler_params=pltpu.CompilerParams(
            dimension_semantics=("parallel", "arbitrary")),
    )(f)


def fro_norm_pair(xf, gtf, nf, *, tr_target=1024):
    """Fused ||xf-gtf||_F and ||xf-nf||_F (single streaming pass over xf)."""
    C = xf.shape[-1]
    x2 = xf.reshape(-1, C).astype(jnp.float32)
    g2 = gtf.reshape(-1, C).astype(jnp.float32)
    n2 = nf.reshape(-1, C).astype(jnp.float32)
    R = x2.shape[0]
    tr = _pick_tile(R, tr_target)
    oxg, oxn = pl.pallas_call(
        _ssq_pair_kernel,
        out_shape=(jax.ShapeDtypeStruct((1, C), jnp.float32),
                   jax.ShapeDtypeStruct((1, C), jnp.float32)),
        grid=(R // tr,),
        in_specs=[pl.BlockSpec((tr, C), lambda i: (i, 0))] * 3,
        out_specs=(pl.BlockSpec((1, C), lambda i: (0, 0)),
                   pl.BlockSpec((1, C), lambda i: (0, 0))),
        compiler_params=pltpu.CompilerParams(dimension_semantics=("arbitrary",)),
    )(x2, g2, n2)
    return jnp.sqrt(jnp.sum(oxg)), jnp.sqrt(jnp.sum(oxn))


def fro_norm_diff(a, b, *, tr_target=1024):
    """torch.norm(a - b, p='fro') over all elements (row-tiled reduction)."""
    C = a.shape[-1]
    a2 = a.reshape(-1, C).astype(jnp.float32)
    b2 = b.reshape(-1, C).astype(jnp.float32)
    R = a2.shape[0]
    tr = _pick_tile(R, tr_target)
    col = pl.pallas_call(
        _ssq_diff_kernel,
        out_shape=jax.ShapeDtypeStruct((1, C), jnp.float32),
        grid=(R // tr,),
        in_specs=[pl.BlockSpec((tr, C), lambda i: (i, 0))] * 2,
        out_specs=pl.BlockSpec((1, C), lambda i: (0, 0)),
        compiler_params=pltpu.CompilerParams(dimension_semantics=("arbitrary",)),
    )(a2, b2)
    return jnp.sqrt(jnp.sum(col))


# --------------------------- "VGG" feature extractor -------------------------

def init_vgg_params(key, cin=3, c1=64, c2=64):
    k1, k2, k3, k4 = jax.random.split(key, 4)
    return {
        'w1': jax.random.normal(k1, (3, 3, cin, c1), jnp.float32) / np.sqrt(9 * cin),
        'b1': jax.random.normal(k2, (c1,), jnp.float32) * 0.01,
        'w2': jax.random.normal(k3, (3, 3, c1, c2), jnp.float32) / np.sqrt(9 * c1),
        'b2': jax.random.normal(k4, (c2,), jnp.float32) * 0.01,
    }


def vgg_features(x_nchw, params, use_input_norm=True, range_norm=False):
    x = x_nchw.astype(jnp.float32)
    if range_norm:
        x = (x + 1.0) / 2.0
    if use_input_norm:
        x = (x - IMAGENET_MEAN.reshape(1, 3, 1, 1)) / IMAGENET_STD.reshape(1, 3, 1, 1)
    h = jnp.transpose(x, (0, 2, 3, 1))  # NCHW -> NHWC (channels on the lane axis)
    feats = {}
    h = conv3x3_relu(h, params['w1'], params['b1'])
    feats['relu1_1'] = h
    h = conv3x3_relu(h, params['w2'], params['b2'])
    feats['relu1_2'] = h
    return feats


# --------------------------- NoisesPerceptualLoss forward --------------------

def noises_perceptual_loss(x, gt, noise, params, layer_weights,
                           perceptual_weight=0.0, style_weight=0.0,
                           noise_weight=1.0):
    # criterion='fro' branch of the PyTorch module.
    N = x.shape[0]
    parts = [x, gt]            # gt.detach(): forward value is identical
    if noise_weight > 0:
        parts.append(noise)
    # One VGG pass over all images: weights stay resident, parallel grid axis = 3N.
    feats = vgg_features(jnp.concatenate(parts, axis=0), params)

    total = jnp.float32(0.0)
    for k, wk in layer_weights.items():
        f = feats[k]
        xf, gtf = f[:N], f[N:2 * N]
        nf = f[2 * N:] if noise_weight > 0 else None

        if perceptual_weight > 0 and noise_weight > 0:
            fro_xg, fro_xn = fro_norm_pair(xf, gtf, nf)
        else:
            fro_xg = fro_norm_diff(xf, gtf) if perceptual_weight > 0 else None
            fro_xn = fro_norm_diff(xf, nf) if noise_weight > 0 else None

        if perceptual_weight > 0:
            total = total + perceptual_weight * wk * fro_xg
        if style_weight > 0:
            gx, gg = gram_matrix(xf), gram_matrix(gtf)
            Cg = gx.shape[-1]
            total = total + style_weight * wk * fro_norm_diff(
                gx.reshape(-1, Cg), gg.reshape(-1, Cg))
        if noise_weight > 0:
            # TODO(synk): torch draws randn_like twice inside forward; a single
            # caller-provided deterministic noise tensor is used here.
            total = total - noise_weight * wk * fro_xn
    return total


# --------------------------- pure-JAX reference -------------------------------
# Mirrors the kernels' numerics model (bf16 MXU operands, f32 accumulation) so the
# correctness check stays tight; the bf16 cast is an intentional precision trade-off.

def reference_loss(x, gt, noise, params, layer_weights,
                   perceptual_weight, style_weight, noise_weight):
    def conv(h, w, b):
        y = lax.conv_general_dilated(
            h.astype(jnp.bfloat16), w.astype(jnp.bfloat16), (1, 1), 'SAME',
            dimension_numbers=('NHWC', 'HWIO', 'NHWC'),
            preferred_element_type=jnp.float32)
        return jax.nn.relu(y + b)

    def feats(inp):
        xx = (inp - IMAGENET_MEAN.reshape(1, 3, 1, 1)) / IMAGENET_STD.reshape(1, 3, 1, 1)
        h = jnp.transpose(xx, (0, 2, 3, 1))
        out = {}
        h = conv(h, params['w1'], params['b1']); out['relu1_1'] = h
        h = conv(h, params['w2'], params['b2']); out['relu1_2'] = h
        return out

    def fro(a, b):
        return jnp.sqrt(jnp.sum((a - b) ** 2))

    def gram(f):
        N, H, W, C = f.shape
        fm = f.reshape(N, H * W, C).astype(jnp.bfloat16)
        g = lax.dot_general(fm, fm,
                            dimension_numbers=(((1,), (1,)), ((0,), (0,))),
                            preferred_element_type=jnp.float32)
        return g / (C * H * W)

    xf, gtf, nf = feats(x), feats(gt), feats(noise)
    total = jnp.float32(0.0)
    for k, w in layer_weights.items():
        if perceptual_weight > 0:
            total += perceptual_weight * w * fro(xf[k], gtf[k])
        if style_weight > 0:
            total += style_weight * w * fro(gram(xf[k]), gram(gtf[k]))
        if noise_weight > 0:
            total -= noise_weight * w * fro(xf[k], nf[k])
    return total


# --------------------------- main ---------------------------------------------

if __name__ == "__main__":
    key = jax.random.PRNGKey(0)
    k_params, k_x, k_gt, k_noise = jax.random.split(key, 4)

    N, C, H, W = 2, 3, 16, 16
    x = jax.random.uniform(k_x, (N, C, H, W), jnp.float32)
    gt = jax.random.uniform(k_gt, (N, C, H, W), jnp.float32)
    noise = jax.random.normal(k_noise, (N, C, H, W), jnp.float32)  # torch.randn_like(x)

    params = init_vgg_params(k_params)
    layer_weights = {'relu1_1': 1.0, 'relu1_2': 0.5}
    # Non-zero perceptual/style weights chosen to exercise every branch
    # (module defaults are 0.0, 0.0, 1.0).
    pw, sw, nw = 0.1, 0.1, 1.0

    loss = noises_perceptual_loss(x, gt, noise, params, layer_weights,
                                  perceptual_weight=pw, style_weight=sw,
                                  noise_weight=nw)
    loss = jax.block_until_ready(loss)

    ref = jax.block_until_ready(
        reference_loss(x, gt, noise, params, layer_weights, pw, sw, nw))

    np.testing.assert_allclose(float(loss), float(ref), rtol=2e-3, atol=1e-3)
    print("KERNEL_OK")
</pallas_src>

<mosaic_0001>
module attributes {stable_mosaic.version = 11 : i64} {
  func.func @_matmul_bias_relu_kernel(%arg0: i32, %arg1: i32, %arg2: memref<1x256x27xbf16, #tpu.memory_space<vmem>>, %arg3: memref<27x64xbf16, #tpu.memory_space<vmem>>, %arg4: memref<1x64xf32, #tpu.memory_space<vmem>>, %arg5: memref<1x256x64xf32, #tpu.memory_space<vmem>>) attributes {dimension_semantics = [#tpu.dimension_semantics<parallel>, #tpu.dimension_semantics<parallel>], iteration_bounds = array<i64: 6, 1>, scalar_prefetch = 0 : i64, scratch_operands = 0 : i64, tpu.core_type = #tpu.core_type<tc>, window_params = [{transform_indices = @transform_0, window_bounds = array<i64: 1, 256, 27>}, {pipeline_mode = #tpu.pipeline_mode<synchronous>, transform_indices = @transform_1, window_bounds = array<i64: 27, 64>}, {pipeline_mode = #tpu.pipeline_mode<synchronous>, transform_indices = @transform_2, window_bounds = array<i64: 1, 64>}, {transform_indices = @transform_3, window_bounds = array<i64: 1, 256, 64>}]} {
    %c0 = arith.constant 0 : index
    %c0_0 = arith.constant 0 : index
    %c0_1 = arith.constant 0 : index
    %0 = vector.load %arg2[%c0, %c0_0, %c0_1] : memref<1x256x27xbf16, #tpu.memory_space<vmem>>, vector<1x256x27xbf16>
    %1 = vector.shape_cast %0 : vector<1x256x27xbf16> to vector<256x27xbf16>
    %c0_2 = arith.constant 0 : index
    %c0_3 = arith.constant 0 : index
    %2 = vector.load %arg3[%c0_2, %c0_3] : memref<27x64xbf16, #tpu.memory_space<vmem>>, vector<27x64xbf16>
    %cst = arith.constant dense<0.000000e+00> : vector<256x64xf32>
    %3 = tpu.matmul %1, %2, %cst {dimension_numbers = #tpu.dot_dimension_numbers<[1], [0], [0], [1], [0, 0, 1, 1], [], []>} : vector<256x27xbf16>, vector<27x64xbf16>, vector<256x64xf32> -> vector<256x64xf32>
    %c0_4 = arith.constant 0 : index
    %c0_5 = arith.constant 0 : index
    %4 = vector.load %arg4[%c0_4, %c0_5] : memref<1x64xf32, #tpu.memory_space<vmem>>, vector<1x64xf32>
    %5 = vector.broadcast %4 : vector<1x64xf32> to vector<256x64xf32>
    %6 = arith.addf %3, %5 : vector<256x64xf32>
    %cst_6 = arith.constant 0.000000e+00 : f32
    %7 = vector.broadcast %cst_6 : f32 to vector<256x64xf32>
    %8 = arith.maximumf %6, %7 : vector<256x64xf32>
    %c0_7 = arith.constant 0 : index
    %c0_8 = arith.constant 0 : index
    %c0_9 = arith.constant 0 : index
    %9 = vector.load %arg5[%c0_7, %c0_8, %c0_9] : memref<1x256x64xf32, #tpu.memory_space<vmem>>, vector<1x256x64xf32>
    %10 = vector.shape_cast %9 : vector<1x256x64xf32> to vector<256x64xf32>
    %11 = vector.shape_cast %8 : vector<256x64xf32> to vector<1x256x64xf32>
    tpu.vector_store %arg5[%c0_7, %c0_8, %c0_9], %11 {strides = array<i32>} : memref<1x256x64xf32, #tpu.memory_space<vmem>>, vector<1x256x64xf32>,
    return
  }
  func.func @transform_0(%arg0: i32, %arg1: i32) -> (i32, i32, i32) {
    %c0_i32 = arith.constant 0 : i32
    %c0_i32_0 = arith.constant 0 : i32
    return %arg0, %arg1, %c0_i32 : i32, i32, i32
  }
  func.func @transform_1(%arg0: i32, %arg1: i32) -> (i32, i32) {
    %c0_i32 = arith.constant 0 : i32
    %c0_i32_0 = arith.constant 0 : i32
    %c0_i32_1 = arith.constant 0 : i32
    return %c0_i32, %c0_i32_0 : i32, i32
  }
  func.func @transform_2(%arg0: i32, %arg1: i32) -> (i32, i32) {
    %c0_i32 = arith.constant 0 : i32
    %c0_i32_0 = arith.constant 0 : i32
    %c0_i32_1 = arith.constant 0 : i32
    return %c0_i32, %c0_i32_0 : i32, i32
  }
  func.func @transform_3(%arg0: i32, %arg1: i32) -> (i32, i32, i32) {
    %c0_i32 = arith.constant 0 : i32
    %c0_i32_0 = arith.constant 0 : i32
    return %arg0, %arg1, %c0_i32 : i32, i32, i32
  }
}

</mosaic_0001>

<bundles_post_ra>
// kernel: tpu_custom_call.1
= control target key start
LH: loop header
LB: loop body
LE: loop exit
PB: predicated region body
PF: predicated region fallthrough
CT: control target
= control target key end

     0   :  { %s908_s12 = smov 0   ;;  %s910_s13 = smov 0   ;;  %s1088_s0 = inlined_call_operand.vmem [shape: bf16[6,256,27], index: 0, kind: input, shape index: {}]   ;;  %s1089_s1 = inlined_call_operand.vmem [shape: bf16[27,64], index: 1, kind: input, shape index: {}]   ;;  %s1090_s2 = inlined_call_operand.vmem [shape: f32[1,64], index: 2, kind: input, shape index: {}]   ;;  %s1091_s3 = inlined_call_operand.vmem [shape: f32[6,256,64], index: 3, kind: output, shape index: {}]  }
   0x1   :  { %s912_s14 = smov 0  }
   0x2 LB: > { %s25_s15 = sadd.s32 1, %s881_s13  ;;  %p718_p0 = scmp.ge.s32.totalorder %s885_s14, 1  ;;  %s885_s14 = sphi %s912_s14, %s13_s14   ;;  %s881_s13 = sphi %s910_s13, %s1093_s13   ;;  %s877_s12 = sphi %s908_s12, %s1092_s12  }
   0x3   : > { %p27_p1 = scmp.ge.s32.totalorder %s25_s15, 6  ;;  %p158_p2 = scmp.lt.s32.totalorder %s885_s14, 7 }
   0x5   : > { %s1095_s15 = smov (%p27_p1, %s25_s15), 0  ;;  %p159_p3 = pnand %p718_p0, %p158_p2 }
   0x6   : > { %v845_v0 = vld [vmem:[%s1089_s1] sm:$0xff] (!%p159_p3)   ;;  %vm394_vm0 = vcmask (!%p159_p3), 1044480   ;;  %v846_v1 = vld [vmem:[%s1089_s1 + $0x8] sm:$0x3f] (!%p159_p3)   ;;  %vm395_vm1 = vcmask (!%p159_p3), 1045504   ;;  %p191_p4 = scmp.lt.s32.totalorder (!%p159_p3), %s877_s12, 5 }
   0x7   : > { %162 = sbr.rel (%p159_p3) target bundleno = 264 (0x108), region = 32  ;;  %780 = vmatprep.subr.bf16.mxu0 (!%p159_p3), %v845_v0  ;;  %816 = vmatprep.subr.bf16.mxu1 (!%p159_p3), %v845_v0  ;;  %v887_v2 = vmov (!%p159_p3), 65535   ;;  %vm345_vm2 = vcmask (!%p159_p3), 220160   ;;  %v975_v22 = vld [vmem:[%s1090_s2] ss:$0 sm:$0xff] (!%p159_p3)  ;;  %vm594_vm3 = vcmask (!%p159_p3), 523264  }
   0x8   : > { %781 = vmatpush3.bf16.msra.mxu0 (!%p159_p3), %v845_v0  ;;  %818 = vmatpush3.bf16.msra.mxu1 (!%p159_p3), %v845_v0  ;;  %v396_v3 = vsel (!%p159_p3), %vm394_vm0, 4294967295, %v887_v2 }
   0x9   : > { %v397_v4 = vsel (!%p159_p3), %vm395_vm1, %v396_v3, 0 }
   0xa   : > { %v399_v5 = vand.u32 (!%p159_p3), %v846_v1, %v397_v4 }
   0xc   : > { %782 = vmatprep.subr.bf16.mxu0 (!%p159_p3), %v399_v5  ;;  %817 = vmatprep.subr.bf16.mxu1 (!%p159_p3), %v399_v5 }
   0xd   : > { %783 = vmatpush3.bf16.msra.mxu0 (!%p159_p3), %v399_v5  ;;  %819 = vmatpush3.bf16.msra.mxu1 (!%p159_p3), %v399_v5 }
   0xe   : > { %s1097_s12 = smov (!%p191_p4, %s877_s12), 5 }
   0xf   : > { %s760_s20 = sshll.u32 %s1097_s12, 7  ;;  %s761_s26 = sshll.u32 %s1097_s12, 8 }
  0x10   : > { %s938_s23 = scalar_lea.vmem %s1088_s0, %s760_s20  ;;  %s982_s29 = scalar_lea.vmem %s1091_s3, %s761_s26 }
  0x11   : > { %v847_v6 = vld [vmem:[%s938_s23] sm:$0xff]   ;;  %v849_v8 = vld [vmem:[%s938_s23 + $0x8] sm:$0xff]   ;;  %v851_v10 = vld [vmem:[%s938_s23 + $0x10] sm:$0xff]  }
  0x12   : > { %v848_v7 = vld [vmem:[%s938_s23 + $0x40] sm:$0xff]   ;;  %784 = vmatprep.mubr.msk.bf16.mxu0 %vm345_vm2, %v847_v6  ;;  %v850_v9 = vld [vmem:[%s938_s23 + $0x48] sm:$0xff]   ;;  %v852_v11 = vld [vmem:[%s938_s23 + $0x50] sm:$0xff]  }
  0x13   : > { %800 = vmatprep.mubr.msk.bf16.mxu1 %vm345_vm2, %v848_v7  ;;  %785 = vmatmul.mubr.msk.bf16.vlgmr.msra.gmra.mrb[0].mxu0 %vm345_vm2, %v849_v8  ;;  %v853_v12 = vld [vmem:[%s938_s23 + $0x18] sm:$0xff]   ;;  %v855_v14 = vld [vmem:[%s938_s23 + $0x20] sm:$0xff]   ;;  %v857_v16 = vld [vmem:[%s938_s23 + $0x28] sm:$0xff]  }
  0x14   : > { %801 = vmatmul.mubr.msk.bf16.vlgmr.msra.gmra.mrb[0].mxu1 %vm345_vm2, %v850_v9  ;;  %788 = vmatprep.mubr.msk.bf16.mxu0 %vm345_vm2, %v851_v10  ;;  %v854_v13 = vld [vmem:[%s938_s23 + $0x58] sm:$0xff]   ;;  %v856_v15 = vld [vmem:[%s938_s23 + $0x60] sm:$0xff]   ;;  %v858_v17 = vld [vmem:[%s938_s23 + $0x68] sm:$0xff]  }
  0x15   : > { %804 = vmatprep.mubr.msk.bf16.mxu1 %vm345_vm2, %v852_v11  ;;  %v859_v18 = vld [vmem:[%s938_s23 + $0x30] sm:$0xff]   ;;  %v861_v20 = vld [vmem:[%s938_s23 + $0x38] sm:$0xff]  }
  0x16   : > { %v860_v19 = vld [vmem:[%s938_s23 + $0x70] sm:$0xff]   ;;  %v862_v21 = vld [vmem:[%s938_s23 + $0x78] sm:$0xff]  }
  0x1b   : > { %789 = vmatmul.mubr.msk.bf16.gmra.mrb[4].mxu0 %vm345_vm2, %v853_v12 }
  0x1c   : > { %805 = vmatmul.mubr.msk.bf16.gmra.mrb[4].mxu1 %vm345_vm2, %v854_v13  ;;  %792 = vmatprep.mubr.msk.bf16.mxu0 %vm345_vm2, %v855_v14 }
  0x1d   : > { %808 = vmatprep.mubr.msk.bf16.mxu1 %vm345_vm2, %v856_v15 }
  0x23   : > { %793 = vmatmul.mubr.msk.bf16.gmra.mrb[8].mxu0 %vm345_vm2, %v857_v16 }
  0x24   : > { %809 = vmatmul.mubr.msk.bf16.gmra.mrb[8].mxu1 %vm345_vm2, %v858_v17  ;;  %796 = vmatprep.mubr.msk.bf16.mxu0 %vm345_vm2, %v859_v18 }
  0x25   : > { %812 = vmatprep.mubr.msk.bf16.mxu1 %vm345_vm2, %v860_v19 }
  0x2b   : > { %797 = vmatmul.mubr.msk.bf16.gmra.mrb[12].mxu0 %vm345_vm2, %v861_v20 }
  0x2c   : > { %813 = vmatmul.mubr.msk.bf16.gmra.mrb[12].mxu1 %vm345_vm2, %v862_v21 }
  0xe6   : > { %v786_v23 = vpop.f32.mrb[0].mxu0 }
  0xe7   : > { %v444_v24 = vadd.f32 %v786_v23, %v975_v22  ;;  %v802_v25 = vpop.f32.mrb[0].mxu1  ;;  %v435_v26 = vpop.f32.mrb[1].mxu0 }
  0xe8   : > { %v508_v27 = vadd.f32 %v802_v25, %v975_v22  ;;  %v436_v28 = vadd.f32 %v975_v22, %v435_v26  ;;  %v499_v29 = vpop.f32.mrb[1].mxu1  ;;  %v787_v30 = vpop.f32.mrb[2].mxu0 }
  0xe9   : > { %v564_v31 = vmax.f32 %v444_v24, 0.0  ;;  %v500_v32 = vadd.f32 %v975_v22, %v499_v29  ;;  %v447_v33 = vadd.f32 %v787_v30, %v975_v22  ;;  %v803_v34 = vpop.f32.mrb[2].mxu1  ;;  %v438_v35 = vpop.f32.mrb[3].mxu0 }
  0xea   : > { %v580_v36 = vmax.f32 %v508_v27, 0.0  ;;  %v562_v37 = vmax.f32 %v436_v28, 0.0  ;;  %v511_v38 = vadd.f32 %v803_v34, %v975_v22  ;;  %v439_v39 = vadd.f32 %v975_v22, %v438_v35  ;;  %v502_v40 = vpop.f32.mrb[3].mxu1 }
  0xeb   : > { %597 = vst.msk [vmem:[%s982_s29 + $0x10] sm:$0xff] %vm594_vm3, %v564_v31  ;;  %v578_v41 = vmax.f32 %v500_v32, 0.0  ;;  %v565_v42 = vmax.f32 %v447_v33, 0.0  ;;  %v503_v43 = vadd.f32 %v975_v22, %v502_v40 }
  0xec   : > { %613 = vst.msk [vmem:[%s982_s29 + $0x90] sm:$0xff] %vm594_vm3, %v580_v36  ;;  %595 = vst.msk [vmem:[%s982_s29] sm:$0xff] %vm594_vm3, %v562_v37  ;;  %v581_v44 = vmax.f32 %v511_v38, 0.0  ;;  %v563_v45 = vmax.f32 %v439_v39, 0.0 }
  0xed   : > { %611 = vst.msk [vmem:[%s982_s29 + $0x80] sm:$0xff] %vm594_vm3, %v578_v41  ;;  %598 = vst.msk [vmem:[%s982_s29 + $0x18] sm:$0xff] %vm594_vm3, %v565_v42  ;;  %v579_v46 = vmax.f32 %v503_v43, 0.0 }
  0xee   : > { %614 = vst.msk [vmem:[%s982_s29 + $0x98] sm:$0xff] %vm594_vm3, %v581_v44  ;;  %596 = vst.msk [vmem:[%s982_s29 + $0x8] sm:$0xff] %vm594_vm3, %v563_v45  ;;  %v790_v47 = vpop.f32.mrb[4].mxu0 }
  0xef   : > { %612 = vst.msk [vmem:[%s982_s29 + $0x88] sm:$0xff] %vm594_vm3, %v579_v46  ;;  %v460_v48 = vadd.f32 %v790_v47, %v975_v22  ;;  %v806_v49 = vpop.f32.mrb[4].mxu1  ;;  %v451_v50 = vpop.f32.mrb[5].mxu0 }
  0xf0   : > { %v524_v51 = vadd.f32 %v806_v49, %v975_v22  ;;  %v452_v52 = vadd.f32 %v975_v22, %v451_v50  ;;  %v515_v53 = vpop.f32.mrb[5].mxu1  ;;  %v791_v54 = vpop.f32.mrb[6].mxu0 }
  0xf1   : > { %v568_v55 = vmax.f32 %v460_v48, 0.0  ;;  %v516_v56 = vadd.f32 %v975_v22, %v515_v53  ;;  %v463_v57 = vadd.f32 %v791_v54, %v975_v22  ;;  %v807_v58 = vpop.f32.mrb[6].mxu1  ;;  %v454_v59 = vpop.f32.mrb[7].mxu0 }
  0xf2   : > { %v584_v60 = vmax.f32 %v524_v51, 0.0  ;;  %v566_v61 = vmax.f32 %v452_v52, 0.0  ;;  %v527_v62 = vadd.f32 %v807_v58, %v975_v22  ;;  %v455_v63 = vadd.f32 %v975_v22, %v454_v59  ;;  %v518_v0 = vpop.f32.mrb[7].mxu1 }
  0xf3   : > { %601 = vst.msk [vmem:[%s982_s29 + $0x30] sm:$0xff] %vm594_vm3, %v568_v55  ;;  %v582_v1 = vmax.f32 %v516_v56, 0.0  ;;  %v569_v2 = vmax.f32 %v463_v57, 0.0  ;;  %v519_v3 = vadd.f32 %v975_v22, %v518_v0 }
  0xf4   : > { %617 = vst.msk [vmem:[%s982_s29 + $0xb0] sm:$0xff] %vm594_vm3, %v584_v60  ;;  %599 = vst.msk [vmem:[%s982_s29 + $0x20] sm:$0xff] %vm594_vm3, %v566_v61  ;;  %v585_v4 = vmax.f32 %v527_v62, 0.0  ;;  %v567_v5 = vmax.f32 %v455_v63, 0.0 }
  0xf5   : > { %615 = vst.msk [vmem:[%s982_s29 + $0xa0] sm:$0xff] %vm594_vm3, %v582_v1  ;;  %602 = vst.msk [vmem:[%s982_s29 + $0x38] sm:$0xff] %vm594_vm3, %v569_v2  ;;  %v583_v6 = vmax.f32 %v519_v3, 0.0 }
  0xf6   : > { %618 = vst.msk [vmem:[%s982_s29 + $0xb8] sm:$0xff] %vm594_vm3, %v585_v4  ;;  %600 = vst.msk [vmem:[%s982_s29 + $0x28] sm:$0xff] %vm594_vm3, %v567_v5  ;;  %v794_v7 = vpop.f32.mrb[8].mxu0 }
  0xf7   : > { %616 = vst.msk [vmem:[%s982_s29 + $0xa8] sm:$0xff] %vm594_vm3, %v583_v6  ;;  %v476_v8 = vadd.f32 %v794_v7, %v975_v22  ;;  %v810_v9 = vpop.f32.mrb[8].mxu1  ;;  %v467_v10 = vpop.f32.mrb[9].mxu0 }
  0xf8   : > { %v540_v11 = vadd.f32 %v810_v9, %v975_v22  ;;  %v468_v12 = vadd.f32 %v975_v22, %v467_v10  ;;  %v531_v13 = vpop.f32.mrb[9].mxu1  ;;  %v795_v14 = vpop.f32.mrb[10].mxu0 }
  0xf9   : > { %v572_v15 = vmax.f32 %v476_v8, 0.0  ;;  %v532_v16 = vadd.f32 %v975_v22, %v531_v13  ;;  %v479_v17 = vadd.f32 %v795_v14, %v975_v22  ;;  %v811_v18 = vpop.f32.mrb[10].mxu1  ;;  %v470_v19 = vpop.f32.mrb[11].mxu0 }
  0xfa   : > { %v588_v20 = vmax.f32 %v540_v11, 0.0  ;;  %v570_v21 = vmax.f32 %v468_v12, 0.0  ;;  %v543_v23 = vadd.f32 %v811_v18, %v975_v22  ;;  %v471_v24 = vadd.f32 %v975_v22, %v470_v19  ;;  %v534_v25 = vpop.f32.mrb[11].mxu1 }
  0xfb   : > { %605 = vst.msk [vmem:[%s982_s29 + $0x50] sm:$0xff] %vm594_vm3, %v572_v15  ;;  %v586_v26 = vmax.f32 %v532_v16, 0.0  ;;  %v573_v27 = vmax.f32 %v479_v17, 0.0  ;;  %v535_v28 = vadd.f32 %v975_v22, %v534_v25 }
  0xfc   : > { %621 = vst.msk [vmem:[%s982_s29 + $0xd0] sm:$0xff] %vm594_vm3, %v588_v20  ;;  %603 = vst.msk [vmem:[%s982_s29 + $0x40] sm:$0xff] %vm594_vm3, %v570_v21  ;;  %v589_v29 = vmax.f32 %v543_v23, 0.0  ;;  %v571_v30 = vmax.f32 %v471_v24, 0.0 }
  0xfd   : > { %619 = vst.msk [vmem:[%s982_s29 + $0xc0] sm:$0xff] %vm594_vm3, %v586_v26  ;;  %606 = vst.msk [vmem:[%s982_s29 + $0x58] sm:$0xff] %vm594_vm3, %v573_v27  ;;  %v587_v31 = vmax.f32 %v535_v28, 0.0 }
  0xfe   : > { %622 = vst.msk [vmem:[%s982_s29 + $0xd8] sm:$0xff] %vm594_vm3, %v589_v29  ;;  %604 = vst.msk [vmem:[%s982_s29 + $0x48] sm:$0xff] %vm594_vm3, %v571_v30  ;;  %v798_v32 = vpop.f32.mrb[12].mxu0 }
  0xff   : > { %620 = vst.msk [vmem:[%s982_s29 + $0xc8] sm:$0xff] %vm594_vm3, %v587_v31  ;;  %v492_v33 = vadd.f32 %v798_v32, %v975_v22  ;;  %v814_v34 = vpop.f32.mrb[12].mxu1  ;;  %v483_v35 = vpop.f32.mrb[13].mxu0 }
 0x100   : > { %v556_v36 = vadd.f32 %v814_v34, %v975_v22  ;;  %v484_v37 = vadd.f32 %v975_v22, %v483_v35  ;;  %v547_v38 = vpop.f32.mrb[13].mxu1  ;;  %v799_v39 = vpop.f32.mrb[14].mxu0 }
 0x101   : > { %v576_v40 = vmax.f32 %v492_v33, 0.0  ;;  %v548_v41 = vadd.f32 %v975_v22, %v547_v38  ;;  %v495_v42 = vadd.f32 %v799_v39, %v975_v22  ;;  %v815_v43 = vpop.f32.mrb[14].mxu1  ;;  %v486_v44 = vpop.f32.mrb[15].mxu0 }
 0x102   : > { %v592_v45 = vmax.f32 %v556_v36, 0.0  ;;  %v574_v46 = vmax.f32 %v484_v37, 0.0  ;;  %v559_v47 = vadd.f32 %v815_v43, %v975_v22  ;;  %v487_v48 = vadd.f32 %v975_v22, %v486_v44  ;;  %v550_v49 = vpop.f32.mrb[15].mxu1 }
 0x103   : > { %609 = vst.msk [vmem:[%s982_s29 + $0x70] sm:$0xff] %vm594_vm3, %v576_v40  ;;  %v590_v50 = vmax.f32 %v548_v41, 0.0  ;;  %v577_v51 = vmax.f32 %v495_v42, 0.0  ;;  %v551_v52 = vadd.f32 %v975_v22, %v550_v49 }
 0x104   : > { %625 = vst.msk [vmem:[%s982_s29 + $0xf0] sm:$0xff] %vm594_vm3, %v592_v45  ;;  %607 = vst.msk [vmem:[%s982_s29 + $0x60] sm:$0xff] %vm594_vm3, %v574_v46  ;;  %v593_v53 = vmax.f32 %v559_v47, 0.0  ;;  %v575_v54 = vmax.f32 %v487_v48, 0.0 }
 0x105   : > { %623 = vst.msk [vmem:[%s982_s29 + $0xe0] sm:$0xff] %vm594_vm3, %v590_v50  ;;  %610 = vst.msk [vmem:[%s982_s29 + $0x78] sm:$0xff] %vm594_vm3, %v577_v51  ;;  %v591_v55 = vmax.f32 %v551_v52, 0.0 }
 0x106   : > { %626 = vst.msk [vmem:[%s982_s29 + $0xf8] sm:$0xff] %vm594_vm3, %v593_v53  ;;  %608 = vst.msk [vmem:[%s982_s29 + $0x68] sm:$0xff] %vm594_vm3, %v575_v54 }
 0x107   : > { %624 = vst.msk [vmem:[%s982_s29 + $0xe8] sm:$0xff] %vm594_vm3, %v591_v55 }
 0x108 PF: > { %s13_s14 = sadd.s32 1, %s885_s14   ;;  %s1092_s12 = smov %s881_s13 }
 0x109   : > { %p10_p5 = scmp.ge.s32.totalorder %s13_s14, 8   ;;  %s1093_s13 = smov %s1095_s15 }
 0x10b   :  { %12 = sbr.rel (!%p10_p5) target bundleno = 2 (0x2), region = 62 }

</bundles_post_ra>
